<compile_context>
chip_gen: v7x
topology: tpu7x:2x2x1
jax: 0.10.0
libtpu: 0.0.40
codegen_flags: <defaults>
</compile_context>

<pallas_src>
import functools

import jax
import jax.numpy as jnp
from jax import lax
from jax.experimental import pallas as pl
from jax.experimental.pallas import tpu as pltpu

P_LINLU = 0.75          # LiNLU p parameter; clamp(0.75, 0.5, 1.0) == 0.75
BN_EPS = 1e-5
LANE = 128
VMEM_LIMIT = 32 * 1024 * 1024   # v7x-safe (64 MiB VMEM/TC); also fine on v5e/v6e


def _round_up(a, b):
    return (a + b - 1) // b * b


def _linlu(z):
    # p*x - (1-p)*min(0, x)
    return P_LINLU * z - (1.0 - P_LINLU) * jnp.minimum(0.0, z)


def _pick_tile(mp):
    """Largest row tile (multiple of 8) dividing mp, preferring >= 2 grid steps
    so the single parallel grid axis can be split across v7x's two TCs."""
    cands = (512, 256, 128, 64, 32, 16, 8)
    for t in cands:
        if mp % t == 0 and mp // t >= 2:
            return t
    for t in cands:
        if mp % t == 0:
            return t
    return 8


# ------------------------- Pallas kernels -------------------------

def _matmul_stats_kernel(p_ref, w_ref, y_ref, stats_ref):
    """One row-tile of conv-as-matmul with fused BN batch statistics.

    p_ref:     (tm, Kp) bf16   im2col patches (K = KH*KW*Cin, zero-padded)
    w_ref:     (Kp, Cp) bf16   folded weight, constant index -> resident in VMEM
    y_ref:     (tm, Cp) bf16   conv output tile
    stats_ref: (1, 8, Cp) f32  rows 0/1 = per-tile sum / sum-of-squares
    """
    acc = jnp.dot(p_ref[...], w_ref[...], preferred_element_type=jnp.float32)
    y_ref[...] = acc.astype(y_ref.dtype)
    cp = acc.shape[1]
    ssum = jnp.sum(acc, axis=0, keepdims=True)        # (1, Cp) f32
    ssq = jnp.sum(acc * acc, axis=0, keepdims=True)   # (1, Cp) f32
    # Build the (8, Cp) stats tile once -> single unmasked store.
    stats_ref[...] = jnp.concatenate(
        [ssum, ssq, jnp.zeros((6, cp), jnp.float32)], axis=0)[None]


def _norm_act_kernel(y_ref, scale_ref, shift_ref, o_ref):
    # z = scale*y + shift (BN folded into a per-channel affine), then LiNLU.
    z = y_ref[...].astype(jnp.float32) * scale_ref[...] + shift_ref[...]
    o_ref[...] = _linlu(z).astype(o_ref.dtype)


def _norm_add_act_out_kernel(y_ref, ysc_ref, scale_ref, shift_ref,
                             scale_sc_ref, shift_sc_ref, o_ref, *, cr):
    # BN2(y2) + BN_sc(shortcut) + residual add + LiNLU, then emit the final
    # channels-on-sublane (cr, tm) layout directly (lane-dense, unpadded in C)
    # so no 128-lane-padded f32 slab goes back through XLA for slice/transpose.
    z = y_ref[...].astype(jnp.float32) * scale_ref[...] + shift_ref[...]
    r = ysc_ref[...].astype(jnp.float32) * scale_sc_ref[...] + shift_sc_ref[...]
    out = _linlu(z + r)                       # (tm, Cp) f32
    o_ref[...] = jnp.transpose(out)[:cr, :]   # (cr, tm)


# ------------------------- Pallas wrappers -------------------------

def _im2col(x, kh, kw, stride, pad):
    """XLA-side patch extraction: (N,H,W,C) -> (Mp, Kp) bf16 with
    M = N*Ho*Wo rows and K = kh*kw*C features ((kh,kw) major, C minor),
    both zero-padded to multiples of 128 so Pallas blocks are lane-dense."""
    n, h, w, c = x.shape
    ho = (h + 2 * pad - kh) // stride + 1
    wo = (w + 2 * pad - kw) // stride + 1
    xp = jnp.pad(x, ((0, 0), (pad, pad), (pad, pad), (0, 0)))
    cols = []
    for i in range(kh):
        for j in range(kw):
            cols.append(lax.slice(
                xp, (0, i, j, 0),
                (n, i + (ho - 1) * stride + 1, j + (wo - 1) * stride + 1, c),
                (1, stride, stride, 1)))
    k = kh * kw * c
    m = n * ho * wo
    patches = jnp.concatenate(cols, axis=-1).reshape(m, k)
    mp = _round_up(m, LANE)
    kp = _round_up(k, LANE)
    patches = jnp.pad(patches, ((0, mp - m), (0, kp - k))).astype(jnp.bfloat16)
    return patches, ho, wo, m


def _fold_weight(w_oihw, cp):
    """(Cout, Cin, KH, KW) -> (Kp, Cp) bf16 matching the im2col feature order."""
    cout, cin, kh, kw = w_oihw.shape
    k = kh * kw * cin
    kp = _round_up(k, LANE)
    w = jnp.transpose(w_oihw, (2, 3, 1, 0)).reshape(k, cout)
    return jnp.pad(w, ((0, kp - k), (0, cp - cout))).astype(jnp.bfloat16)


def _conv_matmul_stats(patches, w):
    """Tiled matmul (one MXU dot per grid step) + fused sum / sum-of-squares."""
    mp, kp = patches.shape
    cp = w.shape[1]
    tm = _pick_tile(mp)
    grid = (mp // tm,)
    y, stats = pl.pallas_call(
        _matmul_stats_kernel,
        grid=grid,
        in_specs=[
            pl.BlockSpec((tm, kp), lambda i: (i, 0)),
            pl.BlockSpec((kp, cp), lambda i: (0, 0)),    # weight stays resident
        ],
        out_specs=[
            pl.BlockSpec((tm, cp), lambda i: (i, 0)),
            pl.BlockSpec((1, 8, cp), lambda i: (i, 0, 0)),
        ],
        out_shape=[
            jax.ShapeDtypeStruct((mp, cp), jnp.bfloat16),
            jax.ShapeDtypeStruct((grid[0], 8, cp), jnp.float32),
        ],
        compiler_params=pltpu.CompilerParams(
            dimension_semantics=("parallel",),
            vmem_limit_bytes=VMEM_LIMIT),
    )(patches, w)
    return y, jnp.sum(stats[:, 0, :], axis=0), jnp.sum(stats[:, 1, :], axis=0)


def _bn_affine(ssum, ssq, count, gamma, beta, cp):
    """Fold batch-stat BN into per-channel scale/shift (f32, shape (1, cp)).
    Single-pass E[x^2]-E[x]^2 in f32 (adequate at these magnitudes/counts)."""
    mean = ssum / count
    var = jnp.maximum(ssq / count - mean * mean, 0.0)
    g = jnp.pad(jnp.ravel(gamma).astype(jnp.float32), (0, cp - gamma.size))
    b = jnp.pad(jnp.ravel(beta).astype(jnp.float32), (0, cp - beta.size))
    scale = g * lax.rsqrt(var + BN_EPS)
    shift = b - mean * scale
    return scale.reshape(1, cp), shift.reshape(1, cp)


def _bn_act_pass(y, scale, shift):
    """Tiled BN-affine + LiNLU over a flat (Mp, Cp) activation (bf16 out)."""
    mp, cp = y.shape
    tm = _pick_tile(mp)
    return pl.pallas_call(
        _norm_act_kernel,
        grid=(mp // tm,),
        in_specs=[pl.BlockSpec((tm, cp), lambda i: (i, 0)),
                  pl.BlockSpec((1, cp), lambda i: (0, 0)),
                  pl.BlockSpec((1, cp), lambda i: (0, 0))],
        out_specs=pl.BlockSpec((tm, cp), lambda i: (i, 0)),
        out_shape=jax.ShapeDtypeStruct((mp, cp), jnp.bfloat16),
        compiler_params=pltpu.CompilerParams(
            dimension_semantics=("parallel",),
            vmem_limit_bytes=VMEM_LIMIT),
    )(y, scale, shift)


def _final_pass(y2, ysc, scale2, shift2, scale_s, shift_s, cout):
    """BN2 + BN_sc + residual add + LiNLU + channel slice + transpose, fused."""
    mp, cp = y2.shape
    cr = _round_up(cout, 8)
    # tm must be a multiple of 128 so the transposed (cr, tm) output block is
    # lane-dense / unmasked; mp is always padded to a multiple of 128.
    tm = next(t for t in (512, 256, 128) if mp % t == 0)
    kernel = functools.partial(_norm_add_act_out_kernel, cr=cr)
    return pl.pallas_call(
        kernel,
        grid=(mp // tm,),
        in_specs=[pl.BlockSpec((tm, cp), lambda i: (i, 0)),
                  pl.BlockSpec((tm, cp), lambda i: (i, 0)),
                  pl.BlockSpec((1, cp), lambda i: (0, 0)),
                  pl.BlockSpec((1, cp), lambda i: (0, 0)),
                  pl.BlockSpec((1, cp), lambda i: (0, 0)),
                  pl.BlockSpec((1, cp), lambda i: (0, 0))],
        out_specs=pl.BlockSpec((cr, tm), lambda i: (0, i)),
        out_shape=jax.ShapeDtypeStruct((cr, mp), jnp.float32),
        compiler_params=pltpu.CompilerParams(
            dimension_semantics=("parallel",),
            vmem_limit_bytes=VMEM_LIMIT),
    )(y2, ysc, scale2, shift2, scale_s, shift_s)


# ------------------------- forward pass -------------------------

def init_conv_block_params(key, first_in_ch, first_out_ch, in_stride):
    ks = jax.random.split(key, 9)

    def conv_w(k, co, ci, kh, kw):
        fan_in = ci * kh * kw
        return (jax.random.normal(k, (co, ci, kh, kw), jnp.float32)
                / jnp.sqrt(jnp.float32(fan_in)))

    params = {
        "w1": conv_w(ks[0], first_out_ch, first_in_ch, 3, 3),
        "g1": 1.0 + 0.1 * jax.random.normal(ks[1], (1, first_out_ch), jnp.float32),
        "b1": 0.1 * jax.random.normal(ks[2], (1, first_out_ch), jnp.float32),
        "w2": conv_w(ks[3], first_out_ch, first_out_ch, 3, 3),
        "g2": 1.0 + 0.1 * jax.random.normal(ks[4], (1, first_out_ch), jnp.float32),
        "b2": 0.1 * jax.random.normal(ks[5], (1, first_out_ch), jnp.float32),
    }
    if in_stride != 1:
        params["wsc"] = conv_w(ks[6], first_out_ch, first_in_ch, 1, 1)
        params["gsc"] = 1.0 + 0.1 * jax.random.normal(ks[7], (1, first_out_ch), jnp.float32)
        params["bsc"] = 0.1 * jax.random.normal(ks[8], (1, first_out_ch), jnp.float32)
    return params


def conv_block_forward(x_nchw, params, in_stride):
    x = jnp.transpose(x_nchw, (0, 2, 3, 1))          # NCHW -> NHWC
    n, h, w, cin = x.shape
    cout = params["w1"].shape[0]
    cp = _round_up(cout, LANE)

    # residual branch: conv3x3(stride) [+ fused BN stats] -> BN1 -> LiNLU
    p1, ho, wo, m = _im2col(x, 3, 3, in_stride, 1)
    y1, s1, q1 = _conv_matmul_stats(p1, _fold_weight(params["w1"], cp))
    scale1, shift1 = _bn_affine(s1, q1, m, params["g1"], params["b1"], cp)
    a1 = _bn_act_pass(y1, scale1, shift1)             # (Mp, Cp) bf16

    # residual branch: conv3x3(stride=1) [+ fused BN stats]; BN2 deferred
    a1_nhwc = a1[:m, :cout].reshape(n, ho, wo, cout)
    p2, _, _, _ = _im2col(a1_nhwc, 3, 3, 1, 1)
    y2, s2, q2 = _conv_matmul_stats(p2, _fold_weight(params["w2"], cp))
    scale2, shift2 = _bn_affine(s2, q2, m, params["g2"], params["b2"], cp)

    # shortcut branch
    mp = y2.shape[0]
    if in_stride != 1:
        psc, _, _, _ = _im2col(x, 1, 1, in_stride, 0)
        ysc, ss, qs = _conv_matmul_stats(psc, _fold_weight(params["wsc"], cp))
        scale_s, shift_s = _bn_affine(ss, qs, m, params["gsc"], params["bsc"], cp)
    else:
        assert cin == cout, "identity shortcut requires Cin == Cout"
        sc = x.astype(jnp.float32).reshape(n * h * w, cin)
        ysc = jnp.pad(sc, ((0, mp - sc.shape[0]), (0, cp - cin)))
        scale_s = jnp.ones((1, cp), jnp.float32)
        shift_s = jnp.zeros((1, cp), jnp.float32)

    # BN2 + BN_sc(shortcut) + add + LiNLU + channel slice + HWC->CHW, fused.
    out_cm = _final_pass(y2, ysc, scale2, shift2, scale_s, shift_s, cout)
    out = out_cm[:cout, :m].reshape(cout, n, ho, wo)
    return jnp.transpose(out, (1, 0, 2, 3))          # back to NCHW


# ------------------------- pure-JAX reference -------------------------

def _ref_forward(x_nchw, params, in_stride):
    # Mirrors the kernel's bf16-matmul-input / f32-accumulate precision choice.
    x = jnp.transpose(x_nchw, (0, 2, 3, 1)).astype(jnp.float32)

    def conv(inp, w, s, pad):
        w_hwio = jnp.transpose(w, (2, 3, 1, 0)).astype(jnp.bfloat16)
        return lax.conv_general_dilated(
            inp.astype(jnp.bfloat16), w_hwio, (s, s), [(pad, pad), (pad, pad)],
            dimension_numbers=("NHWC", "HWIO", "NHWC"),
            preferred_element_type=jnp.float32)

    def bn(y, g, b):
        mean = jnp.mean(y, axis=(0, 1, 2), keepdims=True)
        var = jnp.mean((y - mean) ** 2, axis=(0, 1, 2), keepdims=True)
        return ((y - mean) * lax.rsqrt(var + BN_EPS)
                * g.reshape(1, 1, 1, -1) + b.reshape(1, 1, 1, -1))

    y1 = conv(x, params["w1"], in_stride, 1)
    a1 = _linlu(bn(y1, params["g1"], params["b1"]))
    y2 = conv(a1, params["w2"], 1, 1)
    if in_stride != 1:
        sc = bn(conv(x, params["wsc"], in_stride, 0), params["gsc"], params["bsc"])
    else:
        sc = x
    out = _linlu(bn(y2, params["g2"], params["b2"]) + sc)
    return jnp.transpose(out, (0, 3, 1, 2))


if __name__ == "__main__":
    key = jax.random.PRNGKey(0)
    kx, kp = jax.random.split(key)

    # conv_block(task=None, activation='LiNLU', first_in_ch=4, first_out_ch=8, in_stride=2)
    N, Cin, H, W = 2, 4, 16, 16
    Cout, stride = 8, 2

    x = jax.random.normal(kx, (N, Cin, H, W), jnp.float32)
    params = init_conv_block_params(kp, Cin, Cout, stride)

    fwd = jax.jit(functools.partial(conv_block_forward, in_stride=stride))
    out = jax.block_until_ready(fwd(x, params))

    assert out.shape == (N, Cout, H // stride, W // stride), out.shape
    ref = _ref_forward(x, params, stride)
    max_err = float(jnp.max(jnp.abs(out - ref)))
    assert max_err < 3e-2, f"mismatch vs reference: max abs err = {max_err}"

    print("KERNEL_OK")
</pallas_src>

<mosaic_0001>
module attributes {stable_mosaic.version = 11 : i64} {
  func.func @_matmul_stats_kernel(%arg0: i32, %arg1: memref<64x128xbf16, #tpu.memory_space<vmem>>, %arg2: memref<128x128xbf16, #tpu.memory_space<vmem>>, %arg3: memref<64x128xbf16, #tpu.memory_space<vmem>>, %arg4: memref<1x8x128xf32, #tpu.memory_space<vmem>>) attributes {dimension_semantics = [#tpu.dimension_semantics<parallel>], iteration_bounds = array<i64: 2>, scalar_prefetch = 0 : i64, scratch_operands = 0 : i64, tpu.core_type = #tpu.core_type<tc>, window_params = [{transform_indices = @transform_0, window_bounds = array<i64: 64, 128>}, {pipeline_mode = #tpu.pipeline_mode<synchronous>, transform_indices = @transform_1, window_bounds = array<i64: 128, 128>}, {transform_indices = @transform_2, window_bounds = array<i64: 64, 128>}, {transform_indices = @transform_3, window_bounds = array<i64: 1, 8, 128>}]} {
    %c0 = arith.constant 0 : index
    %c0_0 = arith.constant 0 : index
    %0 = vector.load %arg1[%c0, %c0_0] : memref<64x128xbf16, #tpu.memory_space<vmem>>, vector<64x128xbf16>
    %c0_1 = arith.constant 0 : index
    %c0_2 = arith.constant 0 : index
    %1 = vector.load %arg2[%c0_1, %c0_2] : memref<128x128xbf16, #tpu.memory_space<vmem>>, vector<128x128xbf16>
    %cst = arith.constant dense<0.000000e+00> : vector<64x128xf32>
    %2 = tpu.matmul %0, %1, %cst {dimension_numbers = #tpu.dot_dimension_numbers<[1], [0], [0], [1], [0, 0, 1, 1], [], []>} : vector<64x128xbf16>, vector<128x128xbf16>, vector<64x128xf32> -> vector<64x128xf32>
    %3 = arith.truncf %2 : vector<64x128xf32> to vector<64x128xbf16>
    %c0_3 = arith.constant 0 : index
    %c0_4 = arith.constant 0 : index
    %4 = vector.load %arg3[%c0_3, %c0_4] : memref<64x128xbf16, #tpu.memory_space<vmem>>, vector<64x128xbf16>
    tpu.vector_store %arg3[%c0_3, %c0_4], %3 {strides = array<i32>} : memref<64x128xbf16, #tpu.memory_space<vmem>>, vector<64x128xbf16>,
    %cst_5 = arith.constant dense<0.000000e+00> : vector<128xf32>
    %5 = vector.multi_reduction <add>, %2, %cst_5 [0] : vector<64x128xf32> to vector<128xf32>
    %6 = vector.shape_cast %5 : vector<128xf32> to vector<1x128xf32>
    %7 = arith.mulf %2, %2 : vector<64x128xf32>
    %cst_6 = arith.constant dense<0.000000e+00> : vector<128xf32>
    %8 = vector.multi_reduction <add>, %7, %cst_6 [0] : vector<64x128xf32> to vector<128xf32>
    %9 = vector.shape_cast %8 : vector<128xf32> to vector<1x128xf32>
    %cst_7 = arith.constant 0.000000e+00 : f32
    %10 = vector.broadcast %cst_7 : f32 to vector<6x128xf32>
    %11 = tpu.concatenate %6, %9, %10 in 0 : vector<1x128xf32>, vector<1x128xf32>, vector<6x128xf32> -> vector<8x128xf32>
    %12 = vector.shape_cast %11 : vector<8x128xf32> to vector<1x8x128xf32>
    %c0_8 = arith.constant 0 : index
    %c0_9 = arith.constant 0 : index
    %c0_10 = arith.constant 0 : index
    %13 = vector.load %arg4[%c0_8, %c0_9, %c0_10] : memref<1x8x128xf32, #tpu.memory_space<vmem>>, vector<1x8x128xf32>
    tpu.vector_store %arg4[%c0_8, %c0_9, %c0_10], %12 {strides = array<i32>} : memref<1x8x128xf32, #tpu.memory_space<vmem>>, vector<1x8x128xf32>,
    return
  }
  func.func @transform_0(%arg0: i32) -> (i32, i32) {
    %c0_i32 = arith.constant 0 : i32
    %c0_i32_0 = arith.constant 0 : i32
    return %arg0, %c0_i32 : i32, i32
  }
  func.func @transform_1(%arg0: i32) -> (i32, i32) {
    %c0_i32 = arith.constant 0 : i32
    %c0_i32_0 = arith.constant 0 : i32
    %c0_i32_1 = arith.constant 0 : i32
    return %c0_i32, %c0_i32_0 : i32, i32
  }
  func.func @transform_2(%arg0: i32) -> (i32, i32) {
    %c0_i32 = arith.constant 0 : i32
    %c0_i32_0 = arith.constant 0 : i32
    return %arg0, %c0_i32 : i32, i32
  }
  func.func @transform_3(%arg0: i32) -> (i32, i32, i32) {
    %c0_i32 = arith.constant 0 : i32
    %c0_i32_0 = arith.constant 0 : i32
    %c0_i32_1 = arith.constant 0 : i32
    return %arg0, %c0_i32, %c0_i32_0 : i32, i32, i32
  }
}

module attributes {stable_mosaic.version = 11 : i64} {
  func.func @_norm_act_kernel(%arg0: i32, %arg1: memref<64x128xbf16, #tpu.memory_space<vmem>>, %arg2: memref<1x128xf32, #tpu.memory_space<vmem>>, %arg3: memref<1x128xf32, #tpu.memory_space<vmem>>, %arg4: memref<64x128xbf16, #tpu.memory_space<vmem>>) attributes {dimension_semantics = [#tpu.dimension_semantics<parallel>], iteration_bounds = array<i64: 2>, scalar_prefetch = 0 : i64, scratch_operands = 0 : i64, tpu.core_type = #tpu.core_type<tc>, window_params = [{transform_indices = @transform_0, window_bounds = array<i64: 64, 128>}, {pipeline_mode = #tpu.pipeline_mode<synchronous>, transform_indices = @transform_1, window_bounds = array<i64: 1, 128>}, {pipeline_mode = #tpu.pipeline_mode<synchronous>, transform_indices = @transform_2, window_bounds = array<i64: 1, 128>}, {transform_indices = @transform_3, window_bounds = array<i64: 64, 128>}]} {
    %c0 = arith.constant 0 : index
    %c0_0 = arith.constant 0 : index
    %0 = vector.load %arg1[%c0, %c0_0] : memref<64x128xbf16, #tpu.memory_space<vmem>>, vector<64x128xbf16>
    %1 = arith.extf %0 : vector<64x128xbf16> to vector<64x128xf32>
    %c0_1 = arith.constant 0 : index
    %c0_2 = arith.constant 0 : index
    %2 = vector.load %arg2[%c0_1, %c0_2] : memref<1x128xf32, #tpu.memory_space<vmem>>, vector<1x128xf32>
    %3 = vector.broadcast %2 : vector<1x128xf32> to vector<64x128xf32>
    %4 = arith.mulf %1, %3 : vector<64x128xf32>
    %c0_3 = arith.constant 0 : index
    %c0_4 = arith.constant 0 : index
    %5 = vector.load %arg3[%c0_3, %c0_4] : memref<1x128xf32, #tpu.memory_space<vmem>>, vector<1x128xf32>
    %6 = vector.broadcast %5 : vector<1x128xf32> to vector<64x128xf32>
    %7 = arith.addf %4, %6 : vector<64x128xf32>
    %cst = arith.constant 7.500000e-01 : f32
    %8 = vector.broadcast %cst : f32 to vector<64x128xf32>
    %9 = arith.mulf %8, %7 : vector<64x128xf32>
    %cst_5 = arith.constant 0.000000e+00 : f32
    %10 = vector.broadcast %cst_5 : f32 to vector<64x128xf32>
    %11 = arith.minimumf %10, %7 : vector<64x128xf32>
    %cst_6 = arith.constant 2.500000e-01 : f32
    %12 = vector.broadcast %cst_6 : f32 to vector<64x128xf32>
    %13 = arith.mulf %12, %11 : vector<64x128xf32>
    %14 = arith.subf %9, %13 : vector<64x128xf32>
    %15 = arith.truncf %14 : vector<64x128xf32> to vector<64x128xbf16>
    %c0_7 = arith.constant 0 : index
    %c0_8 = arith.constant 0 : index
    %16 = vector.load %arg4[%c0_7, %c0_8] : memref<64x128xbf16, #tpu.memory_space<vmem>>, vector<64x128xbf16>
    tpu.vector_store %arg4[%c0_7, %c0_8], %15 {strides = array<i32>} : memref<64x128xbf16, #tpu.memory_space<vmem>>, vector<64x128xbf16>,
    return
  }
  func.func @transform_0(%arg0: i32) -> (i32, i32) {
    %c0_i32 = arith.constant 0 : i32
    %c0_i32_0 = arith.constant 0 : i32
    return %arg0, %c0_i32 : i32, i32
  }
  func.func @transform_1(%arg0: i32) -> (i32, i32) {
    %c0_i32 = arith.constant 0 : i32
    %c0_i32_0 = arith.constant 0 : i32
    %c0_i32_1 = arith.constant 0 : i32
    return %c0_i32, %c0_i32_0 : i32, i32
  }
  func.func @transform_2(%arg0: i32) -> (i32, i32) {
    %c0_i32 = arith.constant 0 : i32
    %c0_i32_0 = arith.constant 0 : i32
    %c0_i32_1 = arith.constant 0 : i32
    return %c0_i32, %c0_i32_0 : i32, i32
  }
  func.func @transform_3(%arg0: i32) -> (i32, i32) {
    %c0_i32 = arith.constant 0 : i32
    %c0_i32_0 = arith.constant 0 : i32
    return %arg0, %c0_i32 : i32, i32
  }
}

module attributes {stable_mosaic.version = 11 : i64} {
  func.func @_norm_add_act_out_kernel(%arg0: i32, %arg1: memref<128x128xbf16, #tpu.memory_space<vmem>>, %arg2: memref<128x128xbf16, #tpu.memory_space<vmem>>, %arg3: memref<1x128xf32, #tpu.memory_space<vmem>>, %arg4: memref<1x128xf32, #tpu.memory_space<vmem>>, %arg5: memref<1x128xf32, #tpu.memory_space<vmem>>, %arg6: memref<1x128xf32, #tpu.memory_space<vmem>>, %arg7: memref<8x128xf32, #tpu.memory_space<vmem>>) attributes {dimension_semantics = [#tpu.dimension_semantics<parallel>], iteration_bounds = array<i64: 1>, scalar_prefetch = 0 : i64, scratch_operands = 0 : i64, tpu.core_type = #tpu.core_type<tc>, window_params = [{transform_indices = @transform_0, window_bounds = array<i64: 128, 128>}, {transform_indices = @transform_1, window_bounds = array<i64: 128, 128>}, {pipeline_mode = #tpu.pipeline_mode<synchronous>, transform_indices = @transform_2, window_bounds = array<i64: 1, 128>}, {pipeline_mode = #tpu.pipeline_mode<synchronous>, transform_indices = @transform_3, window_bounds = array<i64: 1, 128>}, {pipeline_mode = #tpu.pipeline_mode<synchronous>, transform_indices = @transform_4, window_bounds = array<i64: 1, 128>}, {pipeline_mode = #tpu.pipeline_mode<synchronous>, transform_indices = @transform_5, window_bounds = array<i64: 1, 128>}, {transform_indices = @transform_6, window_bounds = array<i64: 8, 128>}]} {
    %c0 = arith.constant 0 : index
    %c0_0 = arith.constant 0 : index
    %0 = vector.load %arg1[%c0, %c0_0] : memref<128x128xbf16, #tpu.memory_space<vmem>>, vector<128x128xbf16>
    %1 = arith.extf %0 : vector<128x128xbf16> to vector<128x128xf32>
    %c0_1 = arith.constant 0 : index
    %c0_2 = arith.constant 0 : index
    %2 = vector.load %arg3[%c0_1, %c0_2] : memref<1x128xf32, #tpu.memory_space<vmem>>, vector<1x128xf32>
    %3 = vector.broadcast %2 : vector<1x128xf32> to vector<128x128xf32>
    %4 = arith.mulf %1, %3 : vector<128x128xf32>
    %c0_3 = arith.constant 0 : index
    %c0_4 = arith.constant 0 : index
    %5 = vector.load %arg4[%c0_3, %c0_4] : memref<1x128xf32, #tpu.memory_space<vmem>>, vector<1x128xf32>
    %6 = vector.broadcast %5 : vector<1x128xf32> to vector<128x128xf32>
    %7 = arith.addf %4, %6 : vector<128x128xf32>
    %c0_5 = arith.constant 0 : index
    %c0_6 = arith.constant 0 : index
    %8 = vector.load %arg2[%c0_5, %c0_6] : memref<128x128xbf16, #tpu.memory_space<vmem>>, vector<128x128xbf16>
    %9 = arith.extf %8 : vector<128x128xbf16> to vector<128x128xf32>
    %c0_7 = arith.constant 0 : index
    %c0_8 = arith.constant 0 : index
    %10 = vector.load %arg5[%c0_7, %c0_8] : memref<1x128xf32, #tpu.memory_space<vmem>>, vector<1x128xf32>
    %11 = vector.broadcast %10 : vector<1x128xf32> to vector<128x128xf32>
    %12 = arith.mulf %9, %11 : vector<128x128xf32>
    %c0_9 = arith.constant 0 : index
    %c0_10 = arith.constant 0 : index
    %13 = vector.load %arg6[%c0_9, %c0_10] : memref<1x128xf32, #tpu.memory_space<vmem>>, vector<1x128xf32>
    %14 = vector.broadcast %13 : vector<1x128xf32> to vector<128x128xf32>
    %15 = arith.addf %12, %14 : vector<128x128xf32>
    %16 = arith.addf %7, %15 : vector<128x128xf32>
    %cst = arith.constant 7.500000e-01 : f32
    %17 = vector.broadcast %cst : f32 to vector<128x128xf32>
    %18 = arith.mulf %17, %16 : vector<128x128xf32>
    %cst_11 = arith.constant 0.000000e+00 : f32
    %19 = vector.broadcast %cst_11 : f32 to vector<128x128xf32>
    %20 = arith.minimumf %19, %16 : vector<128x128xf32>
    %cst_12 = arith.constant 2.500000e-01 : f32
    %21 = vector.broadcast %cst_12 : f32 to vector<128x128xf32>
    %22 = arith.mulf %21, %20 : vector<128x128xf32>
    %23 = arith.subf %18, %22 : vector<128x128xf32>
    %24 = tpu.transpose %23, [1, 0] : vector<128x128xf32> -> vector<128x128xf32>
    %25 = vector.extract_strided_slice %24 {offsets = [0, 0], sizes = [8, 128], strides = [1, 1]} : vector<128x128xf32> to vector<8x128xf32>
    %c0_13 = arith.constant 0 : index
    %c0_14 = arith.constant 0 : index
    %26 = vector.load %arg7[%c0_13, %c0_14] : memref<8x128xf32, #tpu.memory_space<vmem>>, vector<8x128xf32>
    tpu.vector_store %arg7[%c0_13, %c0_14], %25 {strides = array<i32>} : memref<8x128xf32, #tpu.memory_space<vmem>>, vector<8x128xf32>,
    return
  }
  func.func @transform_0(%arg0: i32) -> (i32, i32) {
    %c0_i32 = arith.constant 0 : i32
    %c0_i32_0 = arith.constant 0 : i32
    return %arg0, %c0_i32 : i32, i32
  }
  func.func @transform_1(%arg0: i32) -> (i32, i32) {
    %c0_i32 = arith.constant 0 : i32
    %c0_i32_0 = arith.constant 0 : i32
    return %arg0, %c0_i32 : i32, i32
  }
  func.func @transform_2(%arg0: i32) -> (i32, i32) {
    %c0_i32 = arith.constant 0 : i32
    %c0_i32_0 = arith.constant 0 : i32
    %c0_i32_1 = arith.constant 0 : i32
    return %c0_i32, %c0_i32_0 : i32, i32
  }
  func.func @transform_3(%arg0: i32) -> (i32, i32) {
    %c0_i32 = arith.constant 0 : i32
    %c0_i32_0 = arith.constant 0 : i32
    %c0_i32_1 = arith.constant 0 : i32
    return %c0_i32, %c0_i32_0 : i32, i32
  }
  func.func @transform_4(%arg0: i32) -> (i32, i32) {
    %c0_i32 = arith.constant 0 : i32
    %c0_i32_0 = arith.constant 0 : i32
    %c0_i32_1 = arith.constant 0 : i32
    return %c0_i32, %c0_i32_0 : i32, i32
  }
  func.func @transform_5(%arg0: i32) -> (i32, i32) {
    %c0_i32 = arith.constant 0 : i32
    %c0_i32_0 = arith.constant 0 : i32
    %c0_i32_1 = arith.constant 0 : i32
    return %c0_i32, %c0_i32_0 : i32, i32
  }
  func.func @transform_6(%arg0: i32) -> (i32, i32) {
    %c0_i32 = arith.constant 0 : i32
    %c0_i32_0 = arith.constant 0 : i32
    return %c0_i32, %arg0 : i32, i32
  }
}

</mosaic_0001>

<bundles_post_ra>
// kernel: conv_block_forward.8
= control target key start
LH: loop header
LB: loop body
LE: loop exit
PB: predicated region body
PF: predicated region fallthrough
CT: control target
= control target key end

     0   :  { %s676_s12 = smov 0   ;;  %s738_s0 = inlined_call_operand.vmem [shape: bf16[128,128], index: 0, kind: input, shape index: {}]   ;;  %s739_s1 = inlined_call_operand.vmem [shape: bf16[128,128], index: 1, kind: input, shape index: {}]   ;;  %s740_s2 = inlined_call_operand.vmem [shape: bf16[128,128], index: 2, kind: output, shape index: {0}]   ;;  %s741_s3 = inlined_call_operand.vmem [shape: f32[2,8,128], index: 3, kind: output, shape index: {1}]  }
   0x1 LB: > { %s682_s13 = sadd.s32 4294967295, %s654_s12   ;;  %p517_p0 = scmp.ge.s32.totalorder %s654_s12, 1  ;;  %s654_s12 = sphi %s676_s12, %s14_s12  }
   0x2   : > { %p141_p1 = scmp.lt.s32.totalorder %s654_s12, 3 }
   0x4   : > { %p142_p2 = pnand %p517_p0, %p141_p1 }
   0x5   : > { %v636_v0 = vld [vmem:[%s739_s1] sm:$0xff] (!%p142_p2)   ;;  %s518_s16 = sshll.u32 (!%p142_p2), %s682_s13, 3  ;;  %v637_v1 = vld [vmem:[%s739_s1 + $0x8] sm:$0xff] (!%p142_p2)   ;;  %v638_v2 = vld [vmem:[%s739_s1 + $0x10] sm:$0xff] (!%p142_p2)   ;;  %p181_p4 = scmp.lt.s32.totalorder (!%p142_p2), %s682_s13, 1  ;;  %vm421_vm0 = vcmask (!%p142_p2), 1040384  }
   0x6   : > { %145 = sbr.rel (%p142_p2) target bundleno = 284 (0x11c), region = 28  ;;  %p170_p3 = scmp.lt.s32.totalorder (!%p142_p2), %s518_s16, 15  ;;  %588 = vmatprep.subr.bf16.mxu0 (!%p142_p2), %v636_v0  ;;  %612 = vmatprep.subr.bf16.mxu1 (!%p142_p2), %v636_v0  ;;  %v639_v3 = vld [vmem:[%s739_s1 + $0x18] sm:$0xff] (!%p142_p2)   ;;  %v640_v6 = vld [vmem:[%s739_s1 + $0x20] sm:$0xff] (!%p142_p2)   ;;  %v641_v7 = vld [vmem:[%s739_s1 + $0x28] sm:$0xff] (!%p142_p2)   ;;  %vm423_vm1 = vcmask (!%p142_p2), 1041408  }
   0x7   : > { %589 = vmatpush3.bf16.msra.mxu0 (!%p142_p2), %v636_v0  ;;  %620 = vmatpush3.bf16.msra.mxu1 (!%p142_p2), %v636_v0  ;;  %v642_v8 = vld [vmem:[%s739_s1 + $0x30] sm:$0xff] (!%p142_p2)   ;;  %v643_v9 = vld [vmem:[%s739_s1 + $0x38] sm:$0xff] (!%p142_p2)  }
   0x8   : > { %590 = vmatprep.subr.bf16.mxu0 (!%p142_p2), %v637_v1  ;;  %613 = vmatprep.subr.bf16.mxu1 (!%p142_p2), %v637_v1 }
   0xb   : > { %591 = vmatpush3.bf16.msra.mxu0 (!%p142_p2), %v637_v1  ;;  %621 = vmatpush3.bf16.msra.mxu1 (!%p142_p2), %v637_v1 }
   0xc   : > { %592 = vmatprep.subr.bf16.mxu0 (!%p142_p2), %v638_v2  ;;  %614 = vmatprep.subr.bf16.mxu1 (!%p142_p2), %v638_v2 }
   0xd   : > { %s743_s16 = smov (!%p170_p3, %s518_s16), 15  ;;  %s745_s13 = smov (!%p181_p4, %s682_s13), 1 }
   0xe   : > { %s519_s21 = sshll.u32 %s743_s16, 2  ;;  %s522_s11 = sshll.u32 %s745_s13, 3 }
   0xf   : > { %s704_s24 = scalar_lea.vmem %s738_s0, %s519_s21  ;;  %593 = vmatpush3.bf16.msra.mxu0 %v638_v2  ;;  %622 = vmatpush3.bf16.msra.mxu1 %v638_v2  ;;  %s179_s10 = scalar_lea.vmem %s740_s2, %s519_s21 }
  0x10   : > { %v644_v4 = vld [vmem:[%s704_s24] sm:$0xff]   ;;  %v646_v5 = vld [vmem:[%s704_s24 + $0x10] sm:$0xff]   ;;  %594 = vmatprep.subr.bf16.mxu0 %v639_v3  ;;  %615 = vmatprep.subr.bf16.mxu1 %v639_v3  ;;  %v645_v10 = vld [vmem:[%s704_s24 + $0x8] sm:$0xff]   ;;  %s184_s16 = scalar_lea.vmem %s741_s3, %s522_s11 }
  0x11   : > { %604 = vmatprep.mubr.bf16.mxu0 %v644_v4  ;;  %608 = vmatprep.mubr.bf16.mxu1 %v646_v5  ;;  %v647_v11 = vld [vmem:[%s704_s24 + $0x18] sm:$0xff]  }
  0x13   : > { %595 = vmatpush3.bf16.msra.mxu0 %v639_v3  ;;  %623 = vmatpush3.bf16.msra.mxu1 %v639_v3 }
  0x14   : > { %596 = vmatprep.subr.bf16.mxu0 %v640_v6  ;;  %616 = vmatprep.subr.bf16.mxu1 %v640_v6 }
  0x17   : > { %597 = vmatpush3.bf16.msra.mxu0 %v640_v6  ;;  %624 = vmatpush3.bf16.msra.mxu1 %v640_v6 }
  0x18   : > { %598 = vmatprep.subr.bf16.mxu0 %v641_v7  ;;  %617 = vmatprep.subr.bf16.mxu1 %v641_v7 }
  0x1b   : > { %599 = vmatpush3.bf16.msra.mxu0 %v641_v7  ;;  %625 = vmatpush3.bf16.msra.mxu1 %v641_v7 }
  0x1c   : > { %600 = vmatprep.subr.bf16.mxu0 %v642_v8  ;;  %618 = vmatprep.subr.bf16.mxu1 %v642_v8 }
  0x1f   : > { %601 = vmatpush3.bf16.msra.mxu0 %v642_v8  ;;  %626 = vmatpush3.bf16.msra.mxu1 %v642_v8 }
  0x20   : > { %602 = vmatprep.subr.bf16.mxu0 %v643_v9  ;;  %619 = vmatprep.subr.bf16.mxu1 %v643_v9 }
  0x23   : > { %603 = vmatpush3.bf16.msra.mxu0 %v643_v9  ;;  %627 = vmatpush3.bf16.msra.mxu1 %v643_v9 }
  0x26   : > { %605 = vmatmul.mubr.bf16.vlgmr.msra.gmra.mrb[0].mxu0 %v645_v10  ;;  %609 = vmatmul.mubr.bf16.vlgmr.msra.gmra.mrb[0].mxu1 %v647_v11 }
  0xf9   : > { %v606_v12 = vpop.f32.mrb[0].mxu0  ;;  %v610_v13 = vpop.f32.mrb[0].mxu1 }
  0xfa   : > { %v316_v14 = vpop.f32.mrb[1].mxu0  ;;  %v332_v15 = vpop.f32.mrb[1].mxu1  ;;  %v402_v27 = vmul.f32 %v606_v12, %v606_v12  ;;  %v406_v39 = vmul.f32 %v610_v13, %v610_v13 }
  0xfb   : > { %v607_v16 = vpop.f32.mrb[2].mxu0  ;;  %v611_v17 = vpop.f32.mrb[2].mxu1  ;;  %v400_v18 = vmul.f32 %v316_v14, %v316_v14  ;;  %v404_v33 = vmul.f32 %v332_v15, %v332_v15 }
  0xfc   : > { %v561_v19 = vpack.c.bf16 %v607_v16, %v606_v12  ;;  %v319_v20 = vpop.f32.mrb[3].mxu0  ;;  %v571_v21 = vpack.c.bf16 %v611_v17, %v610_v13  ;;  %v335_v22 = vpop.f32.mrb[3].mxu1  ;;  %v403_v30 = vmul.f32 %v607_v16, %v607_v16  ;;  %v407_v42 = vmul.f32 %v611_v17, %v611_v17 }
  0xfd   : > { %v556_v23 = vpack.c.bf16 %v319_v20, %v316_v14  ;;  %v387_v24 = vadd.f32 %v319_v20, %v316_v14  ;;  %v401_v25 = vmul.f32 %v319_v20, %v319_v20  ;;  %v566_v26 = vpack.c.bf16 %v335_v22, %v332_v15 }
  0xfe   : > { %573 = vst [vmem:[%s179_s10 + $0x8] sm:$0xff] %v561_v19   ;;  %575 = vst [vmem:[%s179_s10 + $0x18] sm:$0xff] %v571_v21   ;;  %v405_v38 = vmul.f32 %v335_v22, %v335_v22 }
  0xff   : > { %557 = vst [vmem:[%s179_s10] sm:$0xff] %v556_v23   ;;  %v388_v28 = vadd.f32 %v606_v12, %v387_v24  ;;  %v408_v29 = vadd.f32 %v401_v25, %v400_v18  ;;  %574 = vst [vmem:[%s179_s10 + $0x10] sm:$0xff] %v566_v26  }
 0x101   : > { %v409_v31 = vadd.f32 %v408_v29, %v402_v27  ;;  %v389_v32 = vadd.f32 %v607_v16, %v388_v28 }
 0x103   : > { %v390_v34 = vadd.f32 %v389_v32, %v332_v15  ;;  %v410_v35 = vadd.f32 %v409_v31, %v403_v30 }
 0x105   : > { %v411_v36 = vadd.f32 %v410_v35, %v404_v33  ;;  %v391_v37 = vadd.f32 %v390_v34, %v335_v22 }
 0x107   : > { %v392_v40 = vadd.f32 %v610_v13, %v391_v37  ;;  %v412_v41 = vadd.f32 %v411_v36, %v405_v38 }
 0x109   : > { %v393_v43 = vadd.f32 %v611_v17, %v392_v40  ;;  %v413_v44 = vadd.f32 %v412_v41, %v406_v39 }
 0x10b   : > { %v394_v45 = vrot.slane %v393_v43, 4  ;;  %v414_v46 = vadd.f32 %v413_v44, %v407_v42 }
 0x10d   : > { %v395_v47 = vadd.f32 %v394_v45, %v393_v43  ;;  %v415_v48 = vrot.slane %v414_v46, 4 }
 0x10f   : > { %v396_v49 = vrot.slane %v395_v47, 2  ;;  %v416_v50 = vadd.f32 %v415_v48, %v414_v46 }
 0x111   : > { %v397_v51 = vadd.f32 %v396_v49, %v395_v47  ;;  %v417_v52 = vrot.slane %v416_v50, 2 }
 0x113   : > { %v398_v53 = vrot.slane %v397_v51, 1  ;;  %v418_v54 = vadd.f32 %v417_v52, %v416_v50 }
 0x115   : > { %v419_v55 = vrot.slane %v418_v54, 1  ;;  %v399_v56 = vadd.f32 %v398_v53, %v397_v51 }
 0x117   : > { %v420_v57 = vadd.f32 %v419_v55, %v418_v54 }
 0x119   : > { %v422_v58 = vsel %vm421_vm0, %v399_v56, %v420_v57 }
 0x11a   : > { %v424_v59 = vsel %vm423_vm1, %v422_v58, 0.0 }
 0x11b   : > { %425 = vst [vmem:[%s184_s16] sm:$0xff] %v424_v59 }
 0x11c PF: > { %s14_s12 = sadd.s32 1, %s654_s12  }
 0x11d   : > { %p11_p5 = scmp.ge.s32.totalorder %s14_s12, 4  }
 0x11f   :  { %13 = sbr.rel (!%p11_p5) target bundleno = 1 (0x1), region = 70 }

// kernel: conv_block_forward.6
= control target key start
LH: loop header
LB: loop body
LE: loop exit
PB: predicated region body
PF: predicated region fallthrough
CT: control target
= control target key end

     0   :  { %s455_s12 = smov 0   ;;  %s485_s0 = inlined_call_operand.vmem [shape: bf16[128,128], index: 0, kind: input, shape index: {}]   ;;  %s486_s1 = inlined_call_operand.vmem [shape: f32[1,128], index: 1, kind: input, shape index: {}]   ;;  %s487_s2 = inlined_call_operand.vmem [shape: f32[1,128], index: 2, kind: input, shape index: {}]   ;;  %s488_s3 = inlined_call_operand.vmem [shape: bf16[128,128], index: 3, kind: output, shape index: {}]  }
   0x1 LB: > { %s348_s13 = sadd.s32 4294967295, %s433_s12   ;;  %p352_p0 = scmp.ge.s32.totalorder %s433_s12, 1  ;;  %s433_s12 = sphi %s455_s12, %s13_s12  }
   0x2   : > { %p138_p1 = scmp.lt.s32.totalorder %s433_s12, 3 }
   0x4   : > { %p139_p2 = pnand %p352_p0, %p138_p1 }
   0x5   : > { %s353_s14 = sshll.u32 (!%p139_p2), %s348_s13, 3  ;;  %v357_v0 = vld [vmem:[%s486_s1] ss:$0 sm:$0xff] (!%p139_p2) }
   0x6   : > { %142 = sbr.rel (%p139_p2) target bundleno = 38 (0x26), region = 32  ;;  %p163_p3 = scmp.lt.s32.totalorder (!%p139_p2), %s353_s14, 15  ;;  %v358_v13 = vld [vmem:[%s487_s2] ss:$0 sm:$0xff] (!%p139_p2) }
   0xd   : > { %s490_s14 = smov (!%p163_p3, %s353_s14), 15 }
   0xe   : > { %s354_s15 = sshll.u32 %s490_s14, 2 }
   0xf   : > { %s166_s18 = scalar_lea.vmem %s485_s0, %s354_s15  ;;  %s172_s25 = scalar_lea.vmem %s488_s3, %s354_s15 }
  0x10   : > { %v378_v1 = vld [vmem:[%s166_s18] sm:$0xff]   ;;  %v413_v2 = vld [vmem:[%s166_s18 + $0x8] sm:$0xff]   ;;  %v414_v3 = vld [vmem:[%s166_s18 + $0x10] sm:$0xff]  }
  0x11   : > { %v379_v4 = vunpack.c.l.bf16 %v378_v1  ;;  %v380_v5 = vunpack.c.h.bf16 %v378_v1  ;;  %v383_v6 = vunpack.c.l.bf16 %v413_v2  ;;  %v384_v7 = vunpack.c.h.bf16 %v413_v2  ;;  %v415_v8 = vld [vmem:[%s166_s18 + $0x18] sm:$0xff]  }
  0x12   : > { %v387_v9 = vunpack.c.l.bf16 %v414_v3  ;;  %v388_v10 = vunpack.c.h.bf16 %v414_v3  ;;  %v391_v11 = vunpack.c.l.bf16 %v415_v8  ;;  %v392_v12 = vunpack.c.h.bf16 %v415_v8 }
  0x13   : > { %v197_v14 = vmul.f32 %v379_v4, %v357_v0  ;;  %v198_v15 = vmul.f32 %v380_v5, %v357_v0  ;;  %v199_v16 = vmul.f32 %v383_v6, %v357_v0  ;;  %v200_v17 = vmul.f32 %v384_v7, %v357_v0 }
  0x14   : > { %v201_v18 = vmul.f32 %v387_v9, %v357_v0  ;;  %v202_v19 = vmul.f32 %v388_v10, %v357_v0  ;;  %v203_v20 = vmul.f32 %v391_v11, %v357_v0  ;;  %v204_v21 = vmul.f32 %v392_v12, %v357_v0 }
  0x15   : > { %v212_v22 = vadd.f32 %v358_v13, %v197_v14  ;;  %v213_v23 = vadd.f32 %v358_v13, %v198_v15  ;;  %v214_v24 = vadd.f32 %v358_v13, %v199_v16  ;;  %v215_v25 = vadd.f32 %v358_v13, %v200_v17 }
  0x16   : > { %v216_v26 = vadd.f32 %v358_v13, %v201_v18  ;;  %v217_v27 = vadd.f32 %v358_v13, %v202_v19  ;;  %v218_v28 = vadd.f32 %v358_v13, %v203_v20  ;;  %v219_v29 = vadd.f32 %v358_v13, %v204_v21 }
  0x17   : > { %v220_v30 = vmul.f32 0.75, %v212_v22  ;;  %v221_v31 = vmul.f32 0.75, %v213_v23  ;;  %v228_v32 = vmin.f32 %v212_v22, 0.0  ;;  %v229_v33 = vmin.f32 %v213_v23, 0.0 }
  0x18   : > { %v222_v34 = vmul.f32 0.75, %v214_v24  ;;  %v223_v35 = vmul.f32 0.75, %v215_v25  ;;  %v230_v36 = vmin.f32 %v214_v24, 0.0  ;;  %v231_v37 = vmin.f32 %v215_v25, 0.0 }
  0x19   : > { %v236_v38 = vmul.f32 0.25, %v228_v32  ;;  %v237_v39 = vmul.f32 0.25, %v229_v33  ;;  %v224_v40 = vmul.f32 0.75, %v216_v26  ;;  %v225_v41 = vmul.f32 0.75, %v217_v27 }
  0x1a   : > { %v238_v42 = vmul.f32 0.25, %v230_v36  ;;  %v239_v43 = vmul.f32 0.25, %v231_v37  ;;  %v232_v44 = vmin.f32 %v216_v26, 0.0  ;;  %v233_v45 = vmin.f32 %v217_v27, 0.0 }
  0x1b   : > { %v244_v46 = vsub.f32 %v220_v30, %v236_v38  ;;  %v245_v47 = vsub.f32 %v221_v31, %v237_v39  ;;  %v226_v48 = vmul.f32 0.75, %v218_v28  ;;  %v227_v54 = vmul.f32 0.75, %v219_v29 }
  0x1c   : > { %v246_v49 = vsub.f32 %v222_v34, %v238_v42  ;;  %v247_v50 = vsub.f32 %v223_v35, %v239_v43  ;;  %v240_v51 = vmul.f32 0.25, %v232_v44  ;;  %v241_v52 = vmul.f32 0.25, %v233_v45 }
  0x1d   : > { %v396_v53 = vpack.c.bf16 %v245_v47, %v244_v46  ;;  %v234_v55 = vmin.f32 %v218_v28, 0.0  ;;  %v235_v56 = vmin.f32 %v219_v29, 0.0 }
  0x1e   : > { %v401_v57 = vpack.c.bf16 %v247_v50, %v246_v49  ;;  %v248_v58 = vsub.f32 %v224_v40, %v240_v51  ;;  %v249_v59 = vsub.f32 %v225_v41, %v241_v52 }
  0x1f   : > { %397 = vst [vmem:[%s172_s25] sm:$0xff] %v396_v53   ;;  %v242_v60 = vmul.f32 0.25, %v234_v55  ;;  %v243_v61 = vmul.f32 0.25, %v235_v56 }
  0x20   : > { %416 = vst [vmem:[%s172_s25 + $0x8] sm:$0xff] %v401_v57   ;;  %v406_v62 = vpack.c.bf16 %v249_v59, %v248_v58 }
  0x21   : > { %v250_v63 = vsub.f32 %v226_v48, %v242_v60  ;;  %v251_v0 = vsub.f32 %v227_v54, %v243_v61 }
  0x22   : > { %417 = vst [vmem:[%s172_s25 + $0x10] sm:$0xff] %v406_v62  }
  0x23   : > { %v411_v1 = vpack.c.bf16 %v251_v0, %v250_v63 }
  0x25   : > { %418 = vst [vmem:[%s172_s25 + $0x18] sm:$0xff] %v411_v1  }
  0x26 PF: > { %s13_s12 = sadd.s32 1, %s433_s12  }
  0x27   : > { %p10_p4 = scmp.ge.s32.totalorder %s13_s12, 4  }
  0x29   :  { %12 = sbr.rel (!%p10_p4) target bundleno = 1 (0x1), region = 62 }

// kernel: conv_block_forward.9
= control target key start
LH: loop header
LB: loop body
LE: loop exit
PB: predicated region body
PF: predicated region fallthrough
CT: control target
= control target key end

     0   :  { %s548_s0 = inlined_call_operand.vmem [shape: bf16[128,128], index: 0, kind: input, shape index: {}]   ;;  %s549_s1 = inlined_call_operand.vmem [shape: bf16[128,128], index: 1, kind: input, shape index: {}]   ;;  %s550_s2 = inlined_call_operand.vmem [shape: f32[1,128], index: 2, kind: input, shape index: {}]   ;;  %s551_s3 = inlined_call_operand.vmem [shape: f32[1,128], index: 3, kind: input, shape index: {}]   ;;  %s552_s4 = inlined_call_operand.vmem [shape: f32[1,128], index: 4, kind: input, shape index: {}]   ;;  %s553_s5 = inlined_call_operand.vmem [shape: f32[1,128], index: 5, kind: input, shape index: {}]   ;;  %s554_s6 = inlined_call_operand.vmem [shape: f32[8,128], index: 6, kind: output, shape index: {}]  }
   0x1   :  { %v301_v0 = vld [vmem:[%s548_s0] sm:$0xff]   ;;  %v364_v9 = vld [vmem:[%s548_s0 + $0x8] sm:$0xff]   ;;  %v365_v20 = vld [vmem:[%s548_s0 + $0x10] sm:$0xff]  }
   0x2   :  { %v419_v1 = vld [vmem:[%s550_s2] ss:$0 sm:$0xff]  ;;  %v302_v2 = vunpack.c.l.bf16 %v301_v0  ;;  %v303_v5 = vunpack.c.h.bf16 %v301_v0  ;;  %v371_v10 = vld [vmem:[%s549_s1 + $0x8] sm:$0xff]   ;;  %v306_v14 = vunpack.c.l.bf16 %v364_v9  ;;  %v307_v18 = vunpack.c.h.bf16 %v364_v9  ;;  %v372_v21 = vld [vmem:[%s549_s1 + $0x10] sm:$0xff]  }
   0x3   :  { %v333_v3 = vld [vmem:[%s549_s1] sm:$0xff]   ;;  %v338_v15 = vunpack.c.l.bf16 %v371_v10  ;;  %v339_v19 = vunpack.c.h.bf16 %v371_v10  ;;  %v310_v32 = vunpack.c.l.bf16 %v365_v20  ;;  %v342_v33 = vunpack.c.l.bf16 %v372_v21  ;;  %v366_v53 = vld [vmem:[%s548_s0 + $0x18] sm:$0xff]  }
   0x4   :  { %v427_v4 = vld [vmem:[%s552_s4] ss:$0 sm:$0xff]  ;;  %v334_v7 = vunpack.c.l.bf16 %v333_v3  ;;  %v335_v8 = vunpack.c.h.bf16 %v333_v3  ;;  %v62_v11 = vmul.f32 %v302_v2, %v419_v1  ;;  %v63_v13 = vmul.f32 %v303_v5, %v419_v1  ;;  %v373_v55 = vld [vmem:[%s549_s1 + $0x18] sm:$0xff]  }
   0x5   :  { %v432_v6 = vld [vmem:[%s551_s3] ss:$0 sm:$0xff]  ;;  %v64_v24 = vmul.f32 %v306_v14, %v419_v1  ;;  %v142_v25 = vmul.f32 %v338_v15, %v427_v4  ;;  %v65_v28 = vmul.f32 %v307_v18, %v419_v1  ;;  %v143_v29 = vmul.f32 %v339_v19, %v427_v4 }
   0x6   :  { %v444_v12 = vld [vmem:[%s553_s5] ss:$0 sm:$0xff]  ;;  %v140_v16 = vmul.f32 %v334_v7, %v427_v4  ;;  %v141_v17 = vmul.f32 %v335_v8, %v427_v4  ;;  %v85_v22 = vadd.f32 %v432_v6, %v62_v11  ;;  %v86_v23 = vadd.f32 %v432_v6, %v63_v13 }
   0x7   :  { %v87_v30 = vadd.f32 %v432_v6, %v64_v24  ;;  %v165_v31 = vadd.f32 %v444_v12, %v142_v25  ;;  %v88_v36 = vadd.f32 %v432_v6, %v65_v28  ;;  %v166_v37 = vadd.f32 %v444_v12, %v143_v29  ;;  %v367_v5 = vld [vmem:[%s548_s0 + $0x20] sm:$0xff]  }
   0x8   :  { %v163_v26 = vadd.f32 %v444_v12, %v140_v16  ;;  %v164_v27 = vadd.f32 %v444_v12, %v141_v17  ;;  %v66_v39 = vmul.f32 %v310_v32, %v419_v1  ;;  %v144_v40 = vmul.f32 %v342_v33, %v427_v4  ;;  %v374_v10 = vld [vmem:[%s549_s1 + $0x20] sm:$0xff]  }
   0x9   :  { %v181_v38 = vadd.f32 %v165_v31, %v87_v30  ;;  %v311_v41 = vunpack.c.h.bf16 %v365_v20  ;;  %v182_v47 = vadd.f32 %v166_v37, %v88_v36  ;;  %v343_v54 = vunpack.c.h.bf16 %v372_v21  ;;  %v368_v31 = vld [vmem:[%s548_s0 + $0x28] sm:$0xff]  }
   0xa   :  { %v179_v34 = vadd.f32 %v163_v26, %v85_v22  ;;  %v180_v35 = vadd.f32 %v164_v27, %v86_v23  ;;  %v89_v48 = vadd.f32 %v432_v6, %v66_v39  ;;  %v167_v51 = vadd.f32 %v444_v12, %v144_v40  ;;  %v375_v36 = vld [vmem:[%s549_s1 + $0x28] sm:$0xff]  }
   0xb   :  { %v213_v46 = vmin.f32 %v181_v38, 0.0  ;;  %v67_v52 = vmul.f32 %v311_v41, %v419_v1  ;;  %v197_v57 = vmul.f32 0.75, %v181_v38  ;;  %v214_v59 = vmin.f32 %v182_v47, 0.0 }
   0xc   :  { %v195_v42 = vmul.f32 0.75, %v179_v34  ;;  %v211_v43 = vmin.f32 %v179_v34, 0.0  ;;  %v212_v44 = vmin.f32 %v180_v35, 0.0  ;;  %v196_v45 = vmul.f32 0.75, %v180_v35 }
   0xd   :  { %v229_v58 = vmul.f32 0.25, %v213_v46  ;;  %v183_v60 = vadd.f32 %v167_v51, %v89_v48  ;;  %v90_v61 = vadd.f32 %v432_v6, %v67_v52  ;;  %v145_v62 = vmul.f32 %v343_v54, %v427_v4 }
   0xe   :  { %v227_v49 = vmul.f32 0.25, %v211_v43  ;;  %v228_v50 = vmul.f32 0.25, %v212_v44  ;;  %v314_v63 = vunpack.c.l.bf16 %v366_v53  ;;  %v346_v2 = vunpack.c.l.bf16 %v373_v55 }
   0xf   :  { %v315_v3 = vunpack.c.h.bf16 %v366_v53  ;;  %v168_v7 = vadd.f32 %v444_v12, %v145_v62  ;;  %v347_v9 = vunpack.c.h.bf16 %v373_v55  ;;  %v245_v11 = vsub.f32 %v197_v57, %v229_v58  ;;  %v369_v55 = vld [vmem:[%s548_s0 + $0x30] sm:$0xff]  }
  0x10   :  { %v243_v56 = vsub.f32 %v195_v42, %v227_v49  ;;  %v244_v0 = vsub.f32 %v196_v45, %v228_v50  ;;  %v68_v8 = vmul.f32 %v314_v63, %v419_v1  ;;  %v198_v13 = vmul.f32 0.75, %v182_v47 }
  0x11   :  { %v230_v14 = vmul.f32 0.25, %v214_v59  ;;  %v146_v15 = vmul.f32 %v346_v2, %v427_v4  ;;  %v215_v16 = vmin.f32 %v183_v60, 0.0  ;;  %v184_v17 = vadd.f32 %v168_v7, %v90_v61 }
  0x12   :  { %259 = vxpose.xlu0.b32.start [1/16] (narrow) %v243_v56, 8  ;;  %v69_v18 = vmul.f32 %v315_v3, %v419_v1  ;;  %v318_v19 = vunpack.c.l.bf16 %v367_v5  ;;  %v91_v20 = vadd.f32 %v432_v6, %v68_v8  ;;  %v147_v22 = vmul.f32 %v347_v9, %v427_v4 }
  0x13   :  { %v169_v21 = vadd.f32 %v444_v12, %v146_v15  ;;  %v350_v23 = vunpack.c.l.bf16 %v374_v10  ;;  %v199_v24 = vmul.f32 0.75, %v183_v60  ;;  %v319_v25 = vunpack.c.h.bf16 %v367_v5  ;;  %v376_v60 = vld [vmem:[%s549_s1 + $0x30] sm:$0xff]  }
  0x14   :  { %v351_v26 = vunpack.c.h.bf16 %v374_v10  ;;  %v246_v27 = vsub.f32 %v198_v13, %v230_v14  ;;  %v231_v28 = vmul.f32 0.25, %v215_v16  ;;  %v92_v29 = vadd.f32 %v432_v6, %v69_v18 }
  0x15   :  { %v70_v30 = vmul.f32 %v318_v19, %v419_v1  ;;  %v216_v32 = vmin.f32 %v184_v17, 0.0  ;;  %v185_v33 = vadd.f32 %v169_v21, %v91_v20  ;;  %v170_v34 = vadd.f32 %v444_v12, %v147_v22 }
  0x16   :  { %260 = vxpose.xlu0.b32.cont [2/16] (narrow) %v244_v0, 8  ;;  %v148_v35 = vmul.f32 %v350_v23, %v427_v4  ;;  %v71_v37 = vmul.f32 %v319_v25, %v419_v1  ;;  %v149_v38 = vmul.f32 %v351_v26, %v427_v4  ;;  %v322_v39 = vunpack.c.l.bf16 %v368_v31  ;;  %v370_v23 = vld [vmem:[%s548_s0 + $0x38] sm:$0xff]  }
  0x17   :  { %v247_v40 = vsub.f32 %v199_v24, %v231_v28  ;;  %v200_v41 = vmul.f32 0.75, %v184_v17  ;;  %v93_v42 = vadd.f32 %v432_v6, %v70_v30  ;;  %v354_v43 = vunpack.c.l.bf16 %v375_v36  ;;  %v377_v24 = vld [vmem:[%s549_s1 + $0x38] sm:$0xff]  }
  0x18   :  { %v232_v44 = vmul.f32 0.25, %v216_v32  ;;  %v217_v45 = vmin.f32 %v185_v33, 0.0  ;;  %v186_v46 = vadd.f32 %v170_v34, %v92_v29  ;;  %v171_v47 = vadd.f32 %v444_v12, %v148_v35 }
  0x19   :  { %v94_v48 = vadd.f32 %v432_v6, %v71_v37  ;;  %v172_v49 = vadd.f32 %v444_v12, %v149_v38  ;;  %v72_v50 = vmul.f32 %v322_v39, %v419_v1  ;;  %v201_v51 = vmul.f32 0.75, %v185_v33 }
  0x1a   :  { %261 = vxpose.xlu0.b32.cont [3/16] (narrow) %v245_v11, 8  ;;  %v150_v52 = vmul.f32 %v354_v43, %v427_v4  ;;  %v323_v53 = vunpack.c.h.bf16 %v368_v31  ;;  %v355_v54 = vunpack.c.h.bf16 %v375_v36  ;;  %v248_v56 = vsub.f32 %v200_v41, %v232_v44 }
  0x1b   :  { %v233_v57 = vmul.f32 0.25, %v217_v45  ;;  %v218_v58 = vmin.f32 %v186_v46, 0.0  ;;  %v187_v59 = vadd.f32 %v171_v47, %v93_v42  ;;  %v188_v61 = vadd.f32 %v172_v49, %v94_v48 }
  0x1c   :  { %v95_v62 = vadd.f32 %v432_v6, %v72_v50  ;;  %v326_v63 = vunpack.c.l.bf16 %v369_v55  ;;  %v173_v0 = vadd.f32 %v444_v12, %v150_v52  ;;  %v73_v2 = vmul.f32 %v323_v53, %v419_v1 }
  0x1d   :  { %v151_v3 = vmul.f32 %v355_v54, %v427_v4  ;;  %v358_v5 = vunpack.c.l.bf16 %v376_v60  ;;  %v249_v7 = vsub.f32 %v201_v51, %v233_v57  ;;  %v202_v8 = vmul.f32 0.75, %v186_v46 }
  0x1e   :  { %262 = vxpose.xlu0.b32.cont [4/16] (narrow) %v246_v27, 8  ;;  %v234_v9 = vmul.f32 0.25, %v218_v58  ;;  %v219_v10 = vmin.f32 %v187_v59, 0.0  ;;  %v220_v11 = vmin.f32 %v188_v61, 0.0  ;;  %v74_v13 = vmul.f32 %v326_v63, %v419_v1 }
  0x1f   :  { %v327_v14 = vunpack.c.h.bf16 %v369_v55  ;;  %v189_v15 = vadd.f32 %v173_v0, %v95_v62  ;;  %v96_v16 = vadd.f32 %v432_v6, %v73_v2  ;;  %v174_v17 = vadd.f32 %v444_v12, %v151_v3 }
  0x20   :  { %v152_v18 = vmul.f32 %v358_v5, %v427_v4  ;;  %v250_v19 = vsub.f32 %v202_v8, %v234_v9  ;;  %v203_v20 = vmul.f32 0.75, %v187_v59  ;;  %v235_v21 = vmul.f32 0.25, %v219_v10 }
  0x21   :  { %v359_v22 = vunpack.c.h.bf16 %v376_v60  ;;  %v204_v25 = vmul.f32 0.75, %v188_v61  ;;  %v236_v26 = vmul.f32 0.25, %v220_v11  ;;  %v97_v27 = vadd.f32 %v432_v6, %v74_v13 }
  0x22   :  { %263 = vxpose.xlu0.b32.cont [5/16] (narrow) %v247_v40, 8  ;;  %v75_v28 = vmul.f32 %v327_v14, %v419_v1  ;;  %v221_v29 = vmin.f32 %v189_v15, 0.0  ;;  %v190_v30 = vadd.f32 %v174_v17, %v96_v16  ;;  %v175_v31 = vadd.f32 %v444_v12, %v152_v18 }
  0x23   :  { %v330_v32 = vunpack.c.l.bf16 %v370_v23  ;;  %v251_v33 = vsub.f32 %v203_v20, %v235_v21  ;;  %v153_v34 = vmul.f32 %v359_v22, %v427_v4  ;;  %v362_v35 = vunpack.c.l.bf16 %v377_v24 }
  0x24   :  { %v252_v36 = vsub.f32 %v204_v25, %v236_v26  ;;  %v205_v37 = vmul.f32 0.75, %v189_v15  ;;  %v98_v38 = vadd.f32 %v432_v6, %v75_v28  ;;  %v237_v39 = vmul.f32 0.25, %v221_v29 }
  0x25   :  { %v222_v40 = vmin.f32 %v190_v30, 0.0  ;;  %v191_v41 = vadd.f32 %v175_v31, %v97_v27  ;;  %v76_v42 = vmul.f32 %v330_v32, %v419_v1  ;;  %v176_v43 = vadd.f32 %v444_v12, %v153_v34 }
  0x26   :  { %264 = vxpose.xlu0.b32.cont [6/16] (narrow) %v248_v56, 8  ;;  %v154_v44 = vmul.f32 %v362_v35, %v427_v4  ;;  %v331_v45 = vunpack.c.h.bf16 %v370_v23  ;;  %v363_v46 = vunpack.c.h.bf16 %v377_v24  ;;  %v206_v47 = vmul.f32 0.75, %v190_v30 }
  0x27   :  { %v253_v48 = vsub.f32 %v205_v37, %v237_v39  ;;  %v238_v49 = vmul.f32 0.25, %v222_v40  ;;  %v223_v50 = vmin.f32 %v191_v41, 0.0  ;;  %v99_v51 = vadd.f32 %v432_v6, %v76_v42 }
  0x28   :  { %v192_v52 = vadd.f32 %v176_v43, %v98_v38  ;;  %v177_v53 = vadd.f32 %v444_v12, %v154_v44  ;;  %v77_v54 = vmul.f32 %v331_v45, %v419_v1  ;;  %v155_v55 = vmul.f32 %v363_v46, %v427_v4 }
  0x29   :  { %v254_v56 = vsub.f32 %v206_v47, %v238_v49  ;;  %v207_v57 = vmul.f32 0.75, %v191_v41  ;;  %v239_v58 = vmul.f32 0.25, %v223_v50 }
  0x2a   :  { %265 = vxpose.xlu0.b32.cont [7/16] (narrow) %v249_v7, 8  ;;  %v224_v59 = vmin.f32 %v192_v52, 0.0  ;;  %v193_v60 = vadd.f32 %v177_v53, %v99_v51  ;;  %v100_v61 = vadd.f32 %v432_v6, %v77_v54  ;;  %v178_v62 = vadd.f32 %v444_v12, %v155_v55 }
  0x2b   :  { %v208_v63 = vmul.f32 0.75, %v192_v52  ;;  %v255_v0 = vsub.f32 %v207_v57, %v239_v58 }
  0x2c   :  { %v240_v2 = vmul.f32 0.25, %v224_v59  ;;  %v225_v3 = vmin.f32 %v193_v60, 0.0  ;;  %v194_v5 = vadd.f32 %v178_v62, %v100_v61  ;;  %v209_v7 = vmul.f32 0.75, %v193_v60 }
  0x2e   :  { %266 = vxpose.xlu0.b32.cont [8/16] (narrow) %v250_v19, 8  ;;  %v256_v1 = vsub.f32 %v208_v63, %v240_v2  ;;  %v241_v4 = vmul.f32 0.25, %v225_v3  ;;  %v226_v8 = vmin.f32 %v194_v5, 0.0  ;;  %v210_v10 = vmul.f32 0.75, %v194_v5 }
  0x30   :  { %v257_v9 = vsub.f32 %v209_v7, %v241_v4  ;;  %v242_v11 = vmul.f32 0.25, %v226_v8 }
  0x32   :  { %267 = vxpose.xlu0.b32.cont [9/16] (narrow) %v251_v33, 8  ;;  %v258_v13 = vsub.f32 %v210_v10, %v242_v11 }
  0x36   :  { %268 = vxpose.xlu0.b32.cont [10/16] (narrow) %v252_v36, 8 }
  0x3a   :  { %269 = vxpose.xlu0.b32.cont [11/16] (narrow) %v253_v48, 8 }
  0x3e   :  { %270 = vxpose.xlu0.b32.cont [12/16] (narrow) %v254_v56, 8 }
  0x42   :  { %271 = vxpose.xlu0.b32.cont [13/16] (narrow) %v255_v0, 8 }
  0x46   :  { %272 = vxpose.xlu0.b32.cont [14/16] (narrow) %v256_v1, 8 }
  0x4a   :  { %273 = vxpose.xlu0.b32.cont [15/16] (narrow) %v257_v9, 8 }
  0x4e   :  { %274 = vxpose.xlu0.b32.end [16/16] (narrow) %v258_v13, 8 }
  0x92   :  { %v275_v6 = vpop.trf.xlu0 }
  0x93   :  { %291 = vst [vmem:[%s554_s6] sm:$0xff] %v275_v6 }

</bundles_post_ra>
